<compile_context>
chip_gen: v7x
topology: tpu7x:2x2x1
jax: 0.10.0
libtpu: 0.0.40
codegen_flags: <defaults>
</compile_context>

<pallas_src>
import functools

import jax
import jax.numpy as jnp
from jax.experimental import pallas as pl
from jax.experimental.pallas import tpu as pltpu


def _round_up(x, m):
    return (x + m - 1) // m * m


def _vmem_capacity_bytes() -> int:
    """Physical per-TensorCore VMEM. 128 MiB on v4/v5e/v6e, 64 MiB on v7x."""
    try:
        info = pltpu.get_tpu_info()
        cap = getattr(info, "vmem_capacity_bytes", None)
        if cap:
            return int(cap)
    except Exception:
        pass
    try:
        kind = jax.devices()[0].device_kind.lower()
        if "v7" in kind:
            return 64 << 20
        if any(t in kind for t in ("v4", "v5", "v6")):
            return 128 << 20
    except Exception:
        pass
    return 64 << 20  # conservative fallback (v7x-sized)


def _pick_tiling(M, K, Dp, in_bytes, out_bytes):
    """Largest M-tile whose streams + resident operands fit the VMEM budget.

    vmem_limit = 3/4 of physical per-core VMEM (96 MiB v4/v5e/v6e, 48 MiB v7x).
    Counted against it:
      * 2x (tm, K)  x tile       (double-buffered input stream)
      * 2x (tm, Dp) out tile     (double-buffered output stream)
      * 2x (K, Dp)  weight       (constant index_map, but Pallas still
      * 2x (1, Dp)  bias          double-buffers every operand by default)
      * ~4 MiB headroom for compiler-internal scratch.
    """
    cap = _vmem_capacity_bytes()
    vmem_limit = (cap * 3) // 4
    resident = 2 * K * Dp * in_bytes + 2 * Dp * 4
    headroom = 4 << 20
    stream_budget = vmem_limit - resident - headroom
    per_row = 2 * (K * in_bytes + Dp * out_bytes)
    tm = stream_budget // max(per_row, 1) if stream_budget > 0 else 256
    tm = max(256, min(int(tm), 4096))
    tm -= tm % 256
    if tm >= M:
        tm = M  # single whole-M block (block dim == full array dim is legal)
    return tm, int(vmem_limit)


def _patch_embed_kernel(x_ref, w_ref, b_ref, o_ref):
    # x_ref: (TM, K), w_ref: (K, Dp), b_ref: (1, Dp) f32, o_ref: (TM, Dp)
    acc = jnp.dot(x_ref[...], w_ref[...], preferred_element_type=jnp.float32)
    o_ref[...] = (acc + b_ref[...]).astype(o_ref.dtype)


def patch_embed_forward(x, weight, bias, patch_size, *,
                        compute_dtype=jnp.bfloat16, out_dtype=None,
                        return_padded=False):
    """
    x:      (B, C, H, W)    NCHW, like the PyTorch module
    weight: (D, C, pH, pW)  nn.Conv2d weight layout
    bias:   (D,)
    compute_dtype: matmul operand dtype (default bf16; accumulation is always
        f32). Pass jnp.float32 (or None -> x.dtype) for exact conv numerics.
    out_dtype: output dtype (default: x.dtype).
    return_padded: if True and D is not a multiple of 128, return the
        lane-padded (B, N, Dp) result and let the consumer slice (avoids an
        extra full read+write of the output in HBM).
    returns (B, N, D) with N = (H // pH) * (W // pW)
    """
    B, C, H, W = x.shape
    pH, pW = patch_size
    D = weight.shape[0]
    assert H % pH == 0, f"Input image height {H} is not a multiple of patch height {pH}"
    assert W % pW == 0, f"Input image width {W} is not a multiple of patch width: {pW}"
    Hp, Wp = H // pH, W // pW
    N = Hp * Wp
    K = C * pH * pW          # NOT padded on purpose (see header comment)
    M = B * N

    op_dtype = jnp.dtype(compute_dtype) if compute_dtype is not None else x.dtype
    o_dtype = jnp.dtype(out_dtype) if out_dtype is not None else x.dtype

    # Lane-dense output: pad D (only) to a multiple of 128.
    Dp = _round_up(D, 128)

    # --- patchify: (B, C, H, W) -> (M, K), K ordered as (c, ph, pw) ----------
    # Cast FIRST so any materialized intermediate is already in the (possibly
    # half-width) compute dtype; allow_input_fusion below additionally asks
    # XLA to fuse this producer into the pallas_call input DMA.
    # TODO(synk): a fully in-kernel patchify (raw NCHW input with
    # memory_space=pl.ANY + manual make_async_copy per (b, hp) row block) would
    # remove the wrapper transpose entirely, but the resulting per-step matmul
    # (Wp rows) is tiny and >2-D in-kernel transposes lower poorly in Mosaic.
    x = x.astype(op_dtype)
    patches = x.reshape(B, C, Hp, pH, Wp, pW)
    patches = patches.transpose(0, 2, 4, 1, 3, 5).reshape(M, K)

    w_mat = weight.reshape(D, K).T.astype(op_dtype)            # (K, D), cols = (c, ph, pw)
    if Dp != D:
        w_mat = jnp.pad(w_mat, ((0, 0), (0, Dp - D)))
        b_vec = jnp.pad(bias, (0, Dp - D))
    else:
        b_vec = bias
    b_mat = b_vec.reshape(1, Dp).astype(jnp.float32)

    in_bytes = jnp.dtype(op_dtype).itemsize
    out_bytes = jnp.dtype(o_dtype).itemsize
    tm, vmem_limit = _pick_tiling(M, K, Dp, in_bytes, out_bytes)
    grid = (pl.cdiv(M, tm),)

    cost = pl.CostEstimate(
        flops=2 * M * K * Dp,
        transcendentals=0,
        bytes_accessed=M * K * in_bytes + K * Dp * in_bytes
        + M * Dp * out_bytes + Dp * 4,
    )

    out = pl.pallas_call(
        _patch_embed_kernel,
        out_shape=jax.ShapeDtypeStruct((M, Dp), o_dtype),
        grid_spec=pltpu.PrefetchScalarGridSpec(
            num_scalar_prefetch=0,
            grid=grid,
            in_specs=[
                pl.BlockSpec((tm, K), lambda i: (i, 0)),   # streamed patch rows
                pl.BlockSpec((K, Dp), lambda i: (0, 0)),   # VMEM-resident weight
                pl.BlockSpec((1, Dp), lambda i: (0, 0)),   # VMEM-resident bias
            ],
            out_specs=pl.BlockSpec((tm, Dp), lambda i: (i, 0)),
        ),
        compiler_params=pltpu.CompilerParams(
            dimension_semantics=("parallel",),             # megacore split over M tiles
            allow_input_fusion=[True, True, True],         # fuse patchify into input DMA
            vmem_limit_bytes=vmem_limit,                   # per-generation budget
        ),
        cost_estimate=cost,
    )(patches, w_mat, b_mat)

    if Dp != D:
        if return_padded:
            return out.reshape(B, N, Dp)   # consumer slices / ignores the pad
        out = out[:, :D]                   # extra HBM pass; only for odd D
    # norm = Identity; flatten_embedding = True -> (B, N, D)
    return out.reshape(B, N, D)


if __name__ == "__main__":
    # Small shapes consistent with the module: B=2, C=4, img=16, patch=4, D=32
    B, C, H, W = 2, 4, 16, 16
    patch = (4, 4)
    D = 32

    key = jax.random.PRNGKey(0)
    kx, kw, kb = jax.random.split(key, 3)
    x = jax.random.normal(kx, (B, C, H, W), dtype=jnp.float32)
    weight = jax.random.normal(kw, (D, C, patch[0], patch[1]), dtype=jnp.float32) * 0.02
    bias = jax.random.normal(kb, (D,), dtype=jnp.float32) * 0.02

    # Reference: lax conv (same semantics as nn.Conv2d with kernel = stride = patch)
    ref = jax.lax.conv_general_dilated(
        x, weight, window_strides=patch, padding="VALID",
        dimension_numbers=("NCHW", "OIHW", "NCHW"),
        precision=jax.lax.Precision.HIGHEST)
    ref = ref + bias[None, :, None, None]
    Hp, Wp = H // patch[0], W // patch[1]
    ref = ref.reshape(B, D, Hp * Wp).transpose(0, 2, 1)

    # Default path: bf16 operands, f32 accumulation (memory-bound optimum).
    fwd = jax.jit(functools.partial(patch_embed_forward, patch_size=patch))
    out = jax.block_until_ready(fwd(x, weight, bias))
    assert out.shape == (B, Hp * Wp, D)
    assert jnp.allclose(out, ref, atol=5e-2, rtol=5e-2)

    # Exact path: f32 operands, matches the PyTorch conv numerics tightly.
    fwd_f32 = jax.jit(functools.partial(
        patch_embed_forward, patch_size=patch, compute_dtype=jnp.float32))
    out_f32 = jax.block_until_ready(fwd_f32(x, weight, bias))
    assert out_f32.shape == (B, Hp * Wp, D)
    assert jnp.allclose(out_f32, ref, atol=1e-4, rtol=1e-4)

    print("KERNEL_OK")
</pallas_src>

<mosaic_0001>
module attributes {stable_mosaic.version = 11 : i64} {
  func.func @_patch_embed_kernel(%arg0: i32, %arg1: memref<32x64xbf16, #tpu.memory_space<vmem>>, %arg2: memref<64x128xbf16, #tpu.memory_space<vmem>>, %arg3: memref<1x128xf32, #tpu.memory_space<vmem>>, %arg4: memref<32x128xf32, #tpu.memory_space<vmem>>) attributes {dimension_semantics = [#tpu.dimension_semantics<parallel>], iteration_bounds = array<i64: 1>, scalar_prefetch = 0 : i64, scratch_operands = 0 : i64, tpu.core_type = #tpu.core_type<tc>, window_params = [{transform_indices = @transform_0, window_bounds = array<i64: 32, 64>}, {pipeline_mode = #tpu.pipeline_mode<synchronous>, transform_indices = @transform_1, window_bounds = array<i64: 64, 128>}, {pipeline_mode = #tpu.pipeline_mode<synchronous>, transform_indices = @transform_2, window_bounds = array<i64: 1, 128>}, {transform_indices = @transform_3, window_bounds = array<i64: 32, 128>}]} {
    %c0 = arith.constant 0 : index
    %c0_0 = arith.constant 0 : index
    %0 = vector.load %arg1[%c0, %c0_0] : memref<32x64xbf16, #tpu.memory_space<vmem>>, vector<32x64xbf16>
    %c0_1 = arith.constant 0 : index
    %c0_2 = arith.constant 0 : index
    %1 = vector.load %arg2[%c0_1, %c0_2] : memref<64x128xbf16, #tpu.memory_space<vmem>>, vector<64x128xbf16>
    %cst = arith.constant dense<0.000000e+00> : vector<32x128xf32>
    %2 = tpu.matmul %0, %1, %cst {dimension_numbers = #tpu.dot_dimension_numbers<[1], [0], [0], [1], [0, 0, 1, 1], [], []>} : vector<32x64xbf16>, vector<64x128xbf16>, vector<32x128xf32> -> vector<32x128xf32>
    %c0_3 = arith.constant 0 : index
    %c0_4 = arith.constant 0 : index
    %3 = vector.load %arg3[%c0_3, %c0_4] : memref<1x128xf32, #tpu.memory_space<vmem>>, vector<1x128xf32>
    %4 = vector.broadcast %3 : vector<1x128xf32> to vector<32x128xf32>
    %5 = arith.addf %2, %4 : vector<32x128xf32>
    %c0_5 = arith.constant 0 : index
    %c0_6 = arith.constant 0 : index
    %6 = vector.load %arg4[%c0_5, %c0_6] : memref<32x128xf32, #tpu.memory_space<vmem>>, vector<32x128xf32>
    tpu.vector_store %arg4[%c0_5, %c0_6], %5 {strides = array<i32>} : memref<32x128xf32, #tpu.memory_space<vmem>>, vector<32x128xf32>,
    return
  }
  func.func @transform_0(%arg0: i32) -> (i32, i32) {
    %c0_i32 = arith.constant 0 : i32
    %c0_i32_0 = arith.constant 0 : i32
    return %arg0, %c0_i32 : i32, i32
  }
  func.func @transform_1(%arg0: i32) -> (i32, i32) {
    %c0_i32 = arith.constant 0 : i32
    %c0_i32_0 = arith.constant 0 : i32
    %c0_i32_1 = arith.constant 0 : i32
    return %c0_i32, %c0_i32_0 : i32, i32
  }
  func.func @transform_2(%arg0: i32) -> (i32, i32) {
    %c0_i32 = arith.constant 0 : i32
    %c0_i32_0 = arith.constant 0 : i32
    %c0_i32_1 = arith.constant 0 : i32
    return %c0_i32, %c0_i32_0 : i32, i32
  }
  func.func @transform_3(%arg0: i32) -> (i32, i32) {
    %c0_i32 = arith.constant 0 : i32
    %c0_i32_0 = arith.constant 0 : i32
    return %arg0, %c0_i32 : i32, i32
  }
}

</mosaic_0001>

<bundles_post_ra>
// kernel: patch_embed_forward.2
= control target key start
LH: loop header
LB: loop body
LE: loop exit
PB: predicated region body
PF: predicated region fallthrough
CT: control target
= control target key end

     0   :  { %s485_s0 = inlined_call_operand.vmem [shape: bf16[32,64], index: 0, kind: input, shape index: {}]   ;;  %s486_s1 = inlined_call_operand.vmem [shape: bf16[64,32], index: 1, kind: input, shape index: {}]   ;;  %s487_s2 = inlined_call_operand.<no memory space> [shape: bf16[], index: 2, kind: input, shape index: {}]   ;;  %s488_s3 = inlined_call_operand.vmem [shape: f32[32], index: 3, kind: input, shape index: {}]   ;;  %s489_s4 = inlined_call_operand.<no memory space> [shape: f32[], index: 4, kind: input, shape index: {}]   ;;  %s490_s5 = inlined_call_operand.hbm [shape: f32[32,128], index: 5, kind: output, shape index: {}]  }
   0x1   :  { %v10_v0 = vstv %s487_s2  ;;  %v15_v1 = vstv %s489_s4 }
   0x2   :  { %v11_v2 = vunpack.i.l.bf16 %v10_v0 }
   0x3   :  { %v32_v3 = vld [vmem:[%s486_s1] sm:$0xff]   ;;  %v35_v4 = vlaneseq  ;;  %v335_v5 = vld [vmem:[%s486_s1 + $0x8] sm:$0xff]   ;;  %v337_v6 = vld [vmem:[%s486_s1 + $0x10] sm:$0xff]   ;;  %vm258_vm0 = vcmask 523264  }
   0x4   :  { %v33_v7 = vunpack.c.l.bf16 %v32_v3  ;;  %v54_v8 = vunpack.c.h.bf16 %v32_v3  ;;  %v76_v9 = vunpack.c.l.bf16 %v335_v5  ;;  %v98_v10 = vunpack.c.h.bf16 %v335_v5  ;;  %v339_v11 = vld [vmem:[%s486_s1 + $0x18] sm:$0xff]   ;;  %v376_v14 = vld [vmem:[%s485_s0] sm:$0xff]  }
   0x5   :  { %v36_v12 = vand.u32 127, %v35_v4  ;;  %v120_v13 = vunpack.c.l.bf16 %v337_v6  ;;  %v142_v15 = vunpack.c.h.bf16 %v337_v6  ;;  %v164_v16 = vunpack.c.l.bf16 %v339_v11  ;;  %v197_v18 = vld [vmem:[%s488_s3] sm:$0x1] }
   0x6   :  { %v186_v17 = vunpack.c.h.bf16 %v339_v11  ;;  %vm200_vm1 = vcmp.lt.s32.totalorder %v35_v4, 32 }
   0x7   :  { %16 = vsyncpa [#allocation13], 0  ;;  %vm38_vm2 = vcmp.lt.s32.totalorder %v36_v12, 32  ;;  %364 = vmatprep.mubr.msk.bf16.mxu0 %vm258_vm0, %v376_v14  ;;  %v201_v19 = vsel %vm200_vm1, %v197_v18, %v15_v1  ;;  %v402_v24 = vmov 0.0   ;;  %v377_v41 = vld [vmem:[%s485_s0 + $0x8] sm:$0xff]   ;;  %s403_s7 = smov [#allocation12]  }
   0x8   :  { %v39_v20 = vsel %vm38_vm2, %v33_v7, %v11_v2  ;;  %v60_v21 = vsel %vm38_vm2, %v54_v8, %v11_v2  ;;  %v82_v22 = vsel %vm38_vm2, %v76_v9, %v11_v2  ;;  %v104_v23 = vsel %vm38_vm2, %v98_v10, %v11_v2  ;;  %203 = vst [vmem:[#allocation15] sm:$0x1] %v201_v19  ;;  %s323_s8 = sshll.u32 %s403_s7, 4  ;;  %s324_s8 = int_to_ptr.vmem [resolvable:$true] %s323_s8 }
   0x9   :  { %v40_v25 = vpack.c.bf16 %v402_v24, %v39_v20  ;;  %v62_v26 = vpack.c.bf16 %v402_v24, %v60_v21  ;;  %v84_v27 = vpack.c.bf16 %v402_v24, %v82_v22  ;;  %v106_v28 = vpack.c.bf16 %v402_v24, %v104_v23  ;;  %s378_s0 = scalar_lea.vmem %s324_s8, 512  ;;  %p383_p1 = scmp.lt.s32.totalorder %s324_s8, %s324_s8 }
   0xa   :  { %v126_v29 = vsel %vm38_vm2, %v120_v13, %v11_v2  ;;  %v148_v30 = vsel %vm38_vm2, %v142_v15, %v11_v2  ;;  %v170_v31 = vsel %vm38_vm2, %v164_v16, %v11_v2  ;;  %v192_v32 = vsel %vm38_vm2, %v186_v17, %v11_v2  ;;  %p379_p0 = scmp.ne.s32.totalorder %s324_s8, %s378_s0  ;;  %p384_p2 = scmp.lt.s32.totalorder %s378_s0, %s378_s0 }
   0xb   :  { %42 = vst [vmem:[#allocation14] sm:$0xf] %v40_v25  ;;  %64 = vst [vmem:[#allocation14 + $0x4] sm:$0xf] %v62_v26  ;;  %v128_v33 = vpack.c.bf16 %v402_v24, %v126_v29  ;;  %v150_v34 = vpack.c.bf16 %v402_v24, %v148_v30  ;;  %v172_v35 = vpack.c.bf16 %v402_v24, %v170_v31 }
   0xc   :  { %86 = vst [vmem:[#allocation14 + $0x8] sm:$0xf] %v84_v27  ;;  %108 = vst [vmem:[#allocation14 + $0xc] sm:$0xf] %v106_v28  ;;  %v194_v36 = vpack.c.bf16 %v402_v24, %v192_v32  ;;  %p385_p3 = por %p384_p2, %p383_p1 }
   0xd   :  { %130 = vst [vmem:[#allocation14 + $0x10] sm:$0xf] %v128_v33  ;;  %152 = vst [vmem:[#allocation14 + $0x14] sm:$0xf] %v150_v34 }
   0xe   :  { %174 = vst [vmem:[#allocation14 + $0x18] sm:$0xf] %v172_v35  ;;  %196 = vst [vmem:[#allocation14 + $0x1c] sm:$0xf] %v194_v36  ;;  %p386_p4 = pnand %p385_p3, %p379_p0 }
   0xf   :  { %v341_v42 = vld [vmem:[#allocation15] ss:$0 sm:$0xff] }
  0x12   :  { %v372_v37 = vld [vmem:[#allocation14] sm:$0xff]  }
  0x13   :  { %v373_v38 = vld [vmem:[#allocation14 + $0x8] sm:$0xff]   ;;  %356 = vmatprep.subr.bf16.mxu0 %v372_v37 }
  0x14   :  { %357 = vmatpush3.bf16.msra.mxu0 %v372_v37  ;;  %v374_v39 = vld [vmem:[#allocation14 + $0x10] sm:$0xff]  }
  0x15   :  { %358 = vmatprep.subr.bf16.mxu0 %v373_v38  ;;  %v375_v40 = vld [vmem:[#allocation14 + $0x18] sm:$0xff]  }
  0x18   :  { %359 = vmatpush3.bf16.msra.mxu0 %v373_v38 }
  0x19   :  { %360 = vmatprep.subr.bf16.mxu0 %v374_v39 }
  0x1c   :  { %361 = vmatpush3.bf16.msra.mxu0 %v374_v39 }
  0x1d   :  { %362 = vmatprep.subr.bf16.mxu0 %v375_v40 }
  0x20   :  { %363 = vmatpush3.bf16.msra.mxu0 %v375_v40 }
  0x23   :  { %365 = vmatmul.mubr.msk.bf16.vlgmr.msra.gmra.mrb[0].mxu0 %vm258_vm0, %v377_v41 }
  0xf6   :  { %v366_v43 = vpop.f32.mrb[0].mxu0 }
  0xf7   :  { %v308_v44 = vadd.f32 %v366_v43, %v341_v42  ;;  %v299_v45 = vpop.f32.mrb[1].mxu0 }
  0xf8   :  { %v300_v46 = vadd.f32 %v341_v42, %v299_v45  ;;  %v367_v47 = vpop.f32.mrb[2].mxu0 }
  0xf9   :  { %316 = vst [vmem:[#allocation12 + $0x10] sm:$0xff] %v308_v44  ;;  %v311_v48 = vadd.f32 %v367_v47, %v341_v42  ;;  %v302_v49 = vpop.f32.mrb[3].mxu0 }
  0xfa   :  { %314 = vst [vmem:[#allocation12] sm:$0xff] %v300_v46  ;;  %v303_v50 = vadd.f32 %v341_v42, %v302_v49 }
  0xfb   :  { %317 = vst [vmem:[#allocation12 + $0x18] sm:$0xff] %v311_v48 }
  0xfc   :  { %315 = vst [vmem:[#allocation12 + $0x8] sm:$0xff] %v303_v50 }
  0xfd   :  { %389 = shalt.err (!%p386_p4)
}
  0xfe   :  { %s390_s11 = scalar_lea.hbm %s490_s5, 512 }
  0xff   :  { %p391_p5 = scmp.ne.s32.totalorder %s490_s5, %s390_s11  ;;  %p394_p6 = scmp.lt.u32.totalorder %s390_s11, %s490_s5 }
 0x101   :  { %p396_p7 = pnand %p394_p6, %p391_p5 }
 0x103   :  { %399 = shalt.err (!%p396_p7)
}
 0x104   :  { %s404_s16 = smov 128   ;;  %s405_s17 = smov 8  }
 0x105   :  { %329 = dma.vmem_to_hbm [thread:$0]  %s324_s8, 512, %s490_s5, [#allocation13], %s404_s16, %s404_s16, %s405_s17  }
 0x106   :  { %400 = dma.done.wait [#allocation13], 512  }
 0x107   :  { %401 = vsyncadd [#allocation13], 4294966784 }
 0x108   :  { %333 = vsyncpa [#allocation13], 1 }

</bundles_post_ra>
